<compile_context>
chip_gen: v7x
topology: tpu7x:2x2x1
jax: 0.10.0
libtpu: 0.0.40
codegen_flags: <defaults>
</compile_context>

<pallas_src>
import jax
import jax.numpy as jnp
from jax.experimental import pallas as pl
from jax.experimental.pallas import tpu as pltpu

_LANE = 128
_TILE_BYTES = 8 * 1024 * 1024           # fallback copy: ~8 MiB tiles
_VMEM_LIMIT = 48 * 1024 * 1024          # 4 x tile (in+out double-buffered) < 48 MiB < v7x's 64 MiB
_SMALL_FALLBACK_BYTES = 2 * 1024 * 1024  # small awkward sizes go through one full block


# ---------------------------------------------------------------------------
# Primary path: zero-copy aliased pass-through (no HBM traffic).
# ---------------------------------------------------------------------------
def _touch_kernel(x_ref, o_ref):
    del x_ref  # data already lives in the aliased output buffer
    pltpu.touch(o_ref)  # fake read+write dep: materialize output, move nothing


def _pallas_alias_passthrough(x: jax.Array) -> jax.Array:
    return pl.pallas_call(
        _touch_kernel,
        out_shape=jax.ShapeDtypeStruct(x.shape, x.dtype),
        in_specs=[pl.BlockSpec(memory_space=pl.ANY)],
        out_specs=pl.BlockSpec(memory_space=pl.ANY),
        input_output_aliases={0: 0},
        cost_estimate=pl.CostEstimate(flops=0, transcendentals=0,
                                      bytes_accessed=0),
    )(x)


# ---------------------------------------------------------------------------
# Fallback path: lane-dense, row-tiled identity copy (previous design + fixes).
# ---------------------------------------------------------------------------
def _copy_kernel(x_ref, o_ref):
    o_ref[...] = x_ref[...]


def _sublane_multiple(itemsize: int) -> int:
    # Packed vreg tile height: 8 rows for 4-byte, 16 for 2-byte, 32 for 1-byte.
    return max(8, 32 // itemsize)


def _pallas_copy_2d(x2d: jax.Array, block_rows: int) -> jax.Array:
    rows, cols = x2d.shape
    nbytes = rows * cols * jnp.dtype(x2d.dtype).itemsize
    return pl.pallas_call(
        _copy_kernel,
        out_shape=jax.ShapeDtypeStruct((rows, cols), x2d.dtype),
        grid_spec=pl.GridSpec(
            grid=(pl.cdiv(rows, block_rows),),
            in_specs=[pl.BlockSpec((block_rows, cols), lambda i: (i, 0))],
            out_specs=pl.BlockSpec((block_rows, cols), lambda i: (i, 0)),
        ),
        compiler_params=pltpu.CompilerParams(
            dimension_semantics=("parallel",),
            vmem_limit_bytes=_VMEM_LIMIT,
        ),
        cost_estimate=pl.CostEstimate(flops=0, transcendentals=0,
                                      bytes_accessed=2 * nbytes),
    )(x2d)


def _choose_layout(total: int, itemsize: int):
    """Pick (rows, cols, block_rows): widest lane-dense cols (multiple of 128)
    that divides `total` and keeps one sublane group within the tile budget;
    block_rows sized to ~_TILE_BYTES, rounded to the dtype's packed sublane
    multiple, with >=2 grid steps when there is enough work (v7x megacore)."""
    sub = _sublane_multiple(itemsize)
    max_cols = max(_LANE, (_TILE_BYTES // (sub * itemsize)) // _LANE * _LANE)
    cols = 0
    for k in range(min(total // _LANE, max_cols // _LANE), 0, -1):
        c = _LANE * k
        if total % c == 0:
            cols = c
            break
    if cols == 0:
        return None
    rows = total // cols
    block_rows = max(sub, (_TILE_BYTES // (cols * itemsize)) // sub * sub)
    if block_rows >= rows:
        if rows >= 2 * sub:
            block_rows = max(sub, (rows // 2) // sub * sub)  # >=2 grid steps
        else:
            block_rows = rows  # full-extent block is always legal
    return rows, cols, block_rows


def _pallas_copy(x: jax.Array) -> jax.Array:
    total = x.size
    itemsize = jnp.dtype(x.dtype).itemsize
    layout = _choose_layout(total, itemsize)
    if layout is not None:
        rows, cols, block_rows = layout
        y2d = _pallas_copy_2d(jnp.reshape(x, (rows, cols)), block_rows)
        return jnp.reshape(y2d, x.shape)
    sub = _sublane_multiple(itemsize)
    if total % sub == 0 and total * itemsize <= _SMALL_FALLBACK_BYTES:
        # Small awkward size: one full block laid over `sub` sublanes (avoids
        # the previous (1, total) layout's ~8x sublane-padded VMEM footprint).
        y2d = _pallas_copy_2d(jnp.reshape(x, (sub, total // sub)), sub)
        return jnp.reshape(y2d, x.shape)
    # TODO(synk): no lane-dense factorization for this size; unsqueeze is
    # metadata-only, so skip the device copy.
    return x


# ---------------------------------------------------------------------------
# Public API (mirrors the torchestra module).
# ---------------------------------------------------------------------------
_ALIAS_PATH_OK = True


def _pallas_identity(x: jax.Array) -> jax.Array:
    """Route x through a Pallas kernel; result holds the same values as x."""
    global _ALIAS_PATH_OK
    if _ALIAS_PATH_OK:
        try:
            return _pallas_alias_passthrough(x)
        except Exception:
            # Defensive fallback for builds where the aliased no-op path does
            # not lower; uses the previously validated tiled copy.
            _ALIAS_PATH_OK = False
    return _pallas_copy(x)


def unsqueeze(x: jax.Array, dim: int) -> jax.Array:
    """Equivalent of torch.unsqueeze(x, dim); data path goes through Pallas."""
    ndim = x.ndim
    # torch.unsqueeze accepts dim in [-ndim-1, ndim]; negative dims wrap.
    if dim < 0:
        dim = dim + ndim + 1
    if not (0 <= dim <= ndim):
        raise ValueError(f"dim {dim} out of range for ndim {ndim}")
    out_shape = x.shape[:dim] + (1,) + x.shape[dim:]
    if x.size == 0:
        return jnp.reshape(x, out_shape)  # degenerate tensor: metadata only
    y = _pallas_identity(x)
    return jnp.reshape(y, out_shape)  # metadata-only dim insertion


class Unsqueeze:
    """Pallas/JAX equivalent of the torchestra Unsqueeze module."""

    def __init__(self, dim: int):
        self.dim = dim

    def __call__(self, x: jax.Array) -> jax.Array:
        return unsqueeze(x, self.dim)


if __name__ == "__main__":
    key = jax.random.PRNGKey(0)
    # Input shape consistent with a typical NCHW feature map.
    x = jax.random.normal(key, (2, 4, 16, 16), dtype=jnp.float32)

    mod = Unsqueeze(dim=1)
    y = mod(x)
    jax.block_until_ready(y)
    ref = jnp.expand_dims(x, 1)
    assert y.shape == (2, 1, 4, 16, 16), y.shape
    assert y.dtype == x.dtype
    assert bool(jnp.array_equal(y, ref))

    # Negative dim, as torch allows dim in [-ndim-1, ndim].
    y2 = unsqueeze(x, -1)
    jax.block_until_ready(y2)
    assert y2.shape == (2, 4, 16, 16, 1), y2.shape
    assert bool(jnp.array_equal(y2, jnp.expand_dims(x, -1)))

    # Flat size not a multiple of 128 (handled directly by the ANY-space path).
    x3 = jax.random.normal(jax.random.PRNGKey(1), (3, 5, 7), dtype=jnp.float32)
    y3 = unsqueeze(x3, 0)
    jax.block_until_ready(y3)
    assert y3.shape == (1, 3, 5, 7), y3.shape
    assert bool(jnp.array_equal(y3, jnp.expand_dims(x3, 0)))

    # bf16 input (dtype-agnostic zero-copy path / dtype-aware fallback).
    x4 = jax.random.normal(jax.random.PRNGKey(2), (4, 8, 32), dtype=jnp.bfloat16)
    y4 = unsqueeze(x4, 2)
    jax.block_until_ready(y4)
    assert y4.shape == (4, 8, 1, 32), y4.shape
    assert bool(jnp.array_equal(y4, jnp.expand_dims(x4, 2)))

    print("KERNEL_OK")
</pallas_src>

<mosaic_0001>
module attributes {stable_mosaic.version = 11 : i64} {
  func.func @_touch_kernel(%arg0: memref<2x4x16x16xf32, #tpu.memory_space<any>>, %arg1: memref<2x4x16x16xf32, #tpu.memory_space<any>>) attributes {dimension_semantics = [], scalar_prefetch = 0 : i64, scratch_operands = 0 : i64, tpu.core_type = #tpu.core_type<tc>} {
    return
  }
}

module attributes {stable_mosaic.version = 11 : i64} {
  func.func @_copy_kernel(%arg0: i32, %arg1: memref<1x2048xf32, #tpu.memory_space<vmem>>, %arg2: memref<1x2048xf32, #tpu.memory_space<vmem>>) attributes {dimension_semantics = [#tpu.dimension_semantics<parallel>], iteration_bounds = array<i64: 1>, scalar_prefetch = 0 : i64, scratch_operands = 0 : i64, tpu.core_type = #tpu.core_type<tc>, window_params = [{transform_indices = @transform_0, window_bounds = array<i64: 1, 2048>}, {transform_indices = @transform_1, window_bounds = array<i64: 1, 2048>}]} {
    %c0 = arith.constant 0 : index
    %c0_0 = arith.constant 0 : index
    %0 = vector.load %arg1[%c0, %c0_0] : memref<1x2048xf32, #tpu.memory_space<vmem>>, vector<1x2048xf32>
    %c0_1 = arith.constant 0 : index
    %c0_2 = arith.constant 0 : index
    %1 = vector.load %arg2[%c0_1, %c0_2] : memref<1x2048xf32, #tpu.memory_space<vmem>>, vector<1x2048xf32>
    tpu.vector_store %arg2[%c0_1, %c0_2], %0 {strides = array<i32>} : memref<1x2048xf32, #tpu.memory_space<vmem>>, vector<1x2048xf32>,
    return
  }
  func.func @transform_0(%arg0: i32) -> (i32, i32) {
    %c0_i32 = arith.constant 0 : i32
    %c0_i32_0 = arith.constant 0 : i32
    return %arg0, %c0_i32 : i32, i32
  }
  func.func @transform_1(%arg0: i32) -> (i32, i32) {
    %c0_i32 = arith.constant 0 : i32
    %c0_i32_0 = arith.constant 0 : i32
    return %arg0, %c0_i32 : i32, i32
  }
}

</mosaic_0001>

<bundles_post_ra>
// kernel: tpu_custom_call.1
= control target key start
LH: loop header
LB: loop body
LE: loop exit
PB: predicated region body
PF: predicated region fallthrough
CT: control target
= control target key end

     0   :  { %s16_s0 = inlined_call_operand.hbm [shape: f32[2,4,16,16], index: 0, kind: input, shape index: {}, may-alias: {0,1}]   ;;  %s17_s1 = inlined_call_operand.hbm [shape: f32[2,4,16,16], index: 1, kind: output, shape index: {}, may-alias: {0,1}]  }

// kernel: tpu_custom_call.1
= control target key start
LH: loop header
LB: loop body
LE: loop exit
PB: predicated region body
PF: predicated region fallthrough
CT: control target
= control target key end

     0   :  { %6 = vsyncpa [#allocation3], 0  ;;  %s126_s0 = inlined_call_operand.hbm [shape: f32[1,2048], index: 0, kind: input, shape index: {}]   ;;  %s127_s1 = inlined_call_operand.hbm [shape: f32[1,2048], index: 1, kind: output, shape index: {}]  }
   0x1   :  { %7 = vsyncpa [#allocation4], 0  ;;  %s90_s6 = smov [#allocation2]   ;;  %s42_s10 = scalar_lea.hbm %s126_s0, 256 }
   0x2   :  { %s14_s7 = sshll.u32 %s90_s6, 4  ;;  %p43_p0 = scmp.ne.s32.totalorder %s126_s0, %s42_s10  ;;  %s15_s7 = int_to_ptr.vmem [resolvable:$true] %s14_s7 }
   0x3   :  { %p46_p1 = scmp.lt.u32.totalorder %s42_s10, %s126_s0 }
   0x5   :  { %p48_p2 = pnand %p46_p1, %p43_p0 }
   0x7   :  { %51 = shalt.err (!%p48_p2)
}
   0x8   :  { %s52_s15 = scalar_lea.vmem %s15_s7, 256  ;;  %p57_p4 = scmp.lt.s32.totalorder %s15_s7, %s15_s7 }
   0x9   :  { %p53_p3 = scmp.ne.s32.totalorder %s15_s7, %s52_s15  ;;  %p58_p5 = scmp.lt.s32.totalorder %s52_s15, %s52_s15 }
   0xb   :  { %p59_p6 = por %p58_p5, %p57_p4 }
   0xd   :  { %p60_p7 = pnand %p59_p6, %p53_p3 }
   0xf   :  { %63 = shalt.err (!%p60_p7)
}
  0x10   :  { %17 = dma.hbm_to_vmem [thread:$0]  %s126_s0, 256, %s15_s7, [#allocation3]  }
  0x11   :  { %86 = dma.done.wait [#allocation3], 256  }
  0x12   :  { %87 = vsyncadd [#allocation3], 4294967040  ;;  %s91_s18 = smov [#allocation5]   ;;  %v21_v0 = vld [vmem:[#allocation2] sm:$0xff]  ;;  %v22_v1 = vld [vmem:[#allocation2 + $0x8] sm:$0xff] }
  0x13   :  { %s31_s19 = sshll.u32 %s91_s18, 4  ;;  %23 = vst [vmem:[#allocation5] sm:$0xff] %v21_v0  ;;  %24 = vst [vmem:[#allocation5 + $0x8] sm:$0xff] %v22_v1  ;;  %s32_s19 = int_to_ptr.vmem [resolvable:$true] %s31_s19 }
  0x14   :  { %s64_s20 = scalar_lea.vmem %s32_s19, 256  ;;  %p69_p9 = scmp.lt.s32.totalorder %s32_s19, %s32_s19 }
  0x15   :  { %p65_p8 = scmp.ne.s32.totalorder %s32_s19, %s64_s20  ;;  %p70_p10 = scmp.lt.s32.totalorder %s64_s20, %s64_s20 }
  0x17   :  { %p71_p11 = por %p70_p10, %p69_p9 }
  0x19   :  { %p72_p12 = pnand %p71_p11, %p65_p8 }
  0x1b   :  { %75 = shalt.err (!%p72_p12)
}
  0x1c   :  { %s76_s0 = scalar_lea.hbm %s127_s1, 256 }
  0x1d   :  { %p77_p13 = scmp.ne.s32.totalorder %s127_s1, %s76_s0  ;;  %p80_p0 = scmp.lt.u32.totalorder %s76_s0, %s127_s1 }
  0x1f   :  { %p82_p1 = pnand %p80_p0, %p77_p13 }
  0x21   :  { %85 = shalt.err (!%p82_p1)
}
  0x22   :  { %34 = dma.vmem_to_hbm [thread:$0]  %s32_s19, 256, %s127_s1, [#allocation4]  }
  0x23   :  { %88 = dma.done.wait [#allocation4], 256  }
  0x24   :  { %89 = vsyncadd [#allocation4], 4294967040 }
  0x25   :  { %38 = vsyncpa [#allocation3], 1 }
  0x26   :  { %39 = vsyncpa [#allocation4], 1 }

</bundles_post_ra>
